<compile_context>
chip_gen: v6e
topology: v6e:2x2x1
jax: 0.10.0
libtpu: 0.0.40
codegen_flags: <defaults>
</compile_context>

<pallas_src>
import jax
import jax.numpy as jnp
from jax.experimental import pallas as pl
from jax.experimental.pallas import tpu as pltpu


def _lambda_kernel(x_ref, o_ref):
    # Baked-in lambda: x * sigmoid(x). Compute internally in f32 so bf16
    # inputs get identical numerics on v5e/v6e/v7x (no perf cost: HBM-bound).
    x = x_ref[...]
    xf = x.astype(jnp.float32)
    o_ref[...] = (xf * jax.nn.sigmoid(xf)).astype(o_ref.dtype)


def lambda_forward(x, *, target_block_bytes=2 * 1024 * 1024):
    """Apply the Lambda module (lambd = x * sigmoid(x)) via a Pallas kernel.

    x: any-shape float array (e.g. NCHW). Returns array of same shape/dtype.
    """
    orig_shape = x.shape
    dtype = x.dtype
    n = x.size
    itemsize = jnp.dtype(dtype).itemsize
    sub = {4: 8, 2: 16, 1: 32}.get(itemsize, 8)   # sublane pack for dtype
    lane = 128

    flat = x.reshape(-1)

    # Pad only if the flat size is not a multiple of 128 (rare); the common
    # case is a zero-copy reshape with no extra HBM passes.
    pad = (-n) % lane
    if pad:
        flat = jnp.pad(flat, (0, pad))
    padded_n = n + pad

    # Wide lane-dense last dim: largest multiple of 128 (<= 4096) dividing the
    # flat size -> unmasked, lane-dense stores.
    W = lane
    for cand in (4096, 2048, 1024, 512, 256):
        if padded_n % cand == 0:
            W = cand
            break
    rows = padded_n // W
    x2d = flat.reshape(rows, W)

    # Row tile: ~target_block_bytes per block, multiple of the sublane pack,
    # or the full row count for tiny inputs (full-extent block is exempt from
    # the (8,128) divisibility rule).
    target_rows = max(sub, target_block_bytes // (W * itemsize))
    tr = min(rows, target_rows)
    if tr < rows:
        tr = max(sub, (tr // sub) * sub)

    num_blocks = -(-rows // tr)  # cdiv; ragged tail block is masked by Pallas

    # If everything landed in one grid step but the array is big enough,
    # split in two so v7x's two TensorCores both get work.
    if num_blocks == 1 and rows >= 2 * sub:
        half = -(-rows // 2)
        tr = -(-half // sub) * sub        # ceil(rows/2) rounded up to sublane pack
        num_blocks = -(-rows // tr)       # guaranteed >= 2 here

    out2d = pl.pallas_call(
        _lambda_kernel,
        out_shape=jax.ShapeDtypeStruct((rows, W), dtype),
        grid_spec=pltpu.PrefetchScalarGridSpec(
            num_scalar_prefetch=0,
            grid=(num_blocks,),
            in_specs=[pl.BlockSpec((tr, W), lambda i: (i, 0))],
            out_specs=pl.BlockSpec((tr, W), lambda i: (i, 0)),
        ),
        compiler_params=pltpu.CompilerParams(
            dimension_semantics=("parallel",)),
    )(x2d)

    out = out2d.reshape(-1)
    if pad:
        out = out[:n]
    return out.reshape(orig_shape)


if __name__ == "__main__":
    key = jax.random.PRNGKey(0)
    # Small NCHW input consistent with typical usage of Lambda in conv nets.
    x = jax.random.normal(key, (2, 4, 16, 16), dtype=jnp.float32)

    y = lambda_forward(x)
    y = jax.block_until_ready(y)

    # Reference check against plain JAX (same baked-in lambda).
    y_ref = x * jax.nn.sigmoid(x)
    assert y.shape == x.shape and y.dtype == x.dtype
    assert jnp.allclose(y, y_ref, atol=1e-6, rtol=1e-6)

    print("KERNEL_OK")
</pallas_src>

<mosaic_0001>
module attributes {stable_mosaic.version = 11 : i64} {
  func.func @_lambda_kernel(%arg0: i32, %arg1: memref<1x2048xf32, #tpu.memory_space<vmem>>, %arg2: memref<1x2048xf32, #tpu.memory_space<vmem>>) attributes {dimension_semantics = [#tpu.dimension_semantics<parallel>], iteration_bounds = array<i64: 1>, scalar_prefetch = 0 : i64, scratch_operands = 0 : i64, tpu.core_type = #tpu.core_type<tc>, window_params = [{transform_indices = @transform_0, window_bounds = array<i64: 1, 2048>}, {transform_indices = @transform_1, window_bounds = array<i64: 1, 2048>}]} {
    %c0 = arith.constant 0 : index
    %c0_0 = arith.constant 0 : index
    %0 = vector.load %arg1[%c0, %c0_0] : memref<1x2048xf32, #tpu.memory_space<vmem>>, vector<1x2048xf32>
    %1 = arith.negf %0 : vector<1x2048xf32>
    %2 = math.exp %1 : vector<1x2048xf32>
    %cst = arith.constant 1.000000e+00 : f32
    %3 = vector.broadcast %cst : f32 to vector<1x2048xf32>
    %4 = arith.addf %3, %2 : vector<1x2048xf32>
    %5 = arith.divf %3, %4 : vector<1x2048xf32>
    %6 = arith.mulf %0, %5 : vector<1x2048xf32>
    %c0_1 = arith.constant 0 : index
    %c0_2 = arith.constant 0 : index
    %7 = vector.load %arg2[%c0_1, %c0_2] : memref<1x2048xf32, #tpu.memory_space<vmem>>, vector<1x2048xf32>
    tpu.vector_store %arg2[%c0_1, %c0_2], %6 {strides = array<i32>} : memref<1x2048xf32, #tpu.memory_space<vmem>>, vector<1x2048xf32>,
    return
  }
  func.func @transform_0(%arg0: i32) -> (i32, i32) {
    %c0_i32 = arith.constant 0 : i32
    %c0_i32_0 = arith.constant 0 : i32
    return %arg0, %c0_i32 : i32, i32
  }
  func.func @transform_1(%arg0: i32) -> (i32, i32) {
    %c0_i32 = arith.constant 0 : i32
    %c0_i32_0 = arith.constant 0 : i32
    return %arg0, %c0_i32 : i32, i32
  }
}

</mosaic_0001>

<bundles_post_ra>
// kernel: tpu_custom_call.1
= control target key start
LH: loop header
LB: loop body
LE: loop exit
PB: predicated region body
PF: predicated region fallthrough
CT: control target
= control target key end

     0   :  { %6 = vsyncpa [#allocation3], 0  ;;  %s128_s0 = inlined_call_operand.hbm [shape: f32[1,2048], index: 0, kind: input, shape index: {}]   ;;  %s129_s1 = inlined_call_operand.hbm [shape: f32[1,2048], index: 1, kind: output, shape index: {}]  }
   0x1   :  { %7 = vsyncpa [#allocation4], 0  ;;  %s110_s6 = smov [#allocation2]  }
   0x2   :  { %s14_s7 = sshll.u32 %s110_s6, 4  ;;  %s15_s7 = int_to_ptr.vmem [resolvable:$true] %s14_s7 }
   0x3   :  { %s74_s8 = scalar_lea.vmem %s15_s7, 256  ;;  %p79_p1 = scmp.lt.s32.totalorder %s15_s7, %s15_s7 }
   0x4   :  { %p75_p0 = scmp.ne.s32.totalorder %s15_s7, %s74_s8  ;;  %p80_p2 = scmp.lt.s32.totalorder %s74_s8, %s74_s8 }
   0x6   :  { %p81_p3 = por %p80_p2, %p79_p1 }
   0x8   :  { %p82_p4 = pnand %p81_p3, %p75_p0 }
   0xa   :  { %85 = shalt.err (!%p82_p4)
}
   0xb   :  { %17 = dma.hbm_to_vmem [thread:$0]  %s128_s0, 256, %s15_s7, [#allocation3]  }
   0xc   :  { %106 = dma.done.wait [#allocation3], 256  }
   0xd   :  { %107 = vsyncadd [#allocation3], 4294967040  ;;  %v21_v0 = vld [vmem:[#allocation2] sm:$0xff]  ;;  %v22_v1 = vld [vmem:[#allocation2 + $0x8] sm:$0xff]  ;;  %s111_s11 = smov [#allocation5]  }
   0xe   :  { %v54_v2 = vmul.f32 -1.442695, %v21_v0  ;;  %v55_v3 = vmul.f32 -1.442695, %v22_v1  ;;  %s45_s12 = sshll.u32 %s111_s11, 4  ;;  %s46_s12 = int_to_ptr.vmem [resolvable:$true] %s45_s12 }
   0xf   :  { %s86_s0 = scalar_lea.vmem %s46_s12, 256  ;;  %p91_p6 = scmp.lt.s32.totalorder %s46_s12, %s46_s12 }
  0x10   :  { %58 = vpow2.f32 %v54_v2  ;;  %p87_p5 = scmp.ne.s32.totalorder %s46_s12, %s86_s0  ;;  %p92_p7 = scmp.lt.s32.totalorder %s86_s0, %s86_s0 }
  0x11   :  { %60 = vpow2.f32 %v55_v3 }
  0x12   :  { %p93_p8 = por %p92_p7, %p91_p6 }
  0x14   :  { %p94_p9 = pnand %p93_p8, %p87_p5 }
  0x1d   :  { %v59_v4 = vpop.eup %58 }
  0x1e   :  { %v61_v5 = vpop.eup %60  ;;  %v29_v6 = vadd.f32 1.0, %v59_v4 }
  0x1f   :  { %v30_v7 = vadd.f32 1.0, %v61_v5 }
  0x20   :  { %62 = vrcp.f32 %v29_v6 }
  0x21   :  { %64 = vrcp.f32 %v30_v7 }
  0x2d   :  { %v63_v8 = vpop.eup %62 }
  0x2e   :  { %v65_v9 = vpop.eup %64  ;;  %v35_v10 = vmul.f32 %v63_v8, %v21_v0 }
  0x2f   :  { %v36_v11 = vmul.f32 %v65_v9, %v22_v1 }
  0x30   :  { %37 = vst [vmem:[#allocation5] sm:$0xff] %v35_v10 }
  0x31   :  { %38 = vst [vmem:[#allocation5 + $0x8] sm:$0xff] %v36_v11 }
  0x32   :  { %97 = shalt.err (!%p94_p9)
}
  0x33   :  { %48 = dma.vmem_to_hbm [thread:$0]  %s46_s12, 256, %s129_s1, [#allocation4]  }
  0x34   :  { %108 = dma.done.wait [#allocation4], 256  }
  0x35   :  { %109 = vsyncadd [#allocation4], 4294967040 }
  0x36   :  { %52 = vsyncpa [#allocation3], 1 }
  0x37   :  { %53 = vsyncpa [#allocation4], 1 }

</bundles_post_ra>
